<compile_context>
chip_gen: v5e
topology: v5e:2x2
jax: 0.10.0
libtpu: 0.0.40
codegen_flags: <defaults>
</compile_context>

<pallas_src>
import jax
import jax.numpy as jnp
from jax.experimental import pallas as pl
from jax.experimental.pallas import tpu as pltpu

LANE = 128  # lane width: batch tiles are multiples of this


def _round_up(x, m):
    return (x + m - 1) // m * m


def _elu(x):
    # nn.ELU with default alpha=1.0.  exp() argument is clamped at 0 so the
    # discarded branch of the select never overflows.
    # TODO(synk): switch to jnp.expm1 once its Mosaic lowering is confirmed on
    # all target generations; exp(min(x,0))-1 is kept to guarantee compilation.
    return jnp.where(x > 0, x, jnp.exp(jnp.minimum(x, 0.0)) - 1.0)


def _h_mlp_kernel(s_ref, w1_ref, b1_ref, w2_ref, b2_ref, w3_ref, b3_ref,
                  w4_ref, b4_ref, o_ref):
    """Fused 4-layer MLP head, batch on the lane axis.

    s_ref : (obs_pad, TB)    f32 input tile (batch on lanes)
    wN_ref: (out, in)        f32 weight (torch layout), VMEM-resident
    bN_ref: (out, 1)         f32 bias column, VMEM-resident
    o_ref : (n_act_pad, TB)  f32 lane-dense output tile
    """
    s = s_ref[...]                                                   # (obs_pad, TB)
    h = _elu(jnp.dot(w1_ref[...], s, preferred_element_type=jnp.float32)
             + b1_ref[...])                                          # (64, TB)
    h = _elu(jnp.dot(w2_ref[...], h, preferred_element_type=jnp.float32)
             + b2_ref[...])                                          # (16, TB)
    h = _elu(jnp.dot(w3_ref[...], h, preferred_element_type=jnp.float32)
             + b3_ref[...])                                          # (16, TB)
    o_ref[...] = (jnp.dot(w4_ref[...], h, preferred_element_type=jnp.float32)
                  + b4_ref[...])                                     # (n_act_pad, TB)


def init_h_params(key, obs_dim, n_actions):
    """Deterministic init mimicking torch.nn.Linear defaults:
    U(-1/sqrt(fan_in), 1/sqrt(fan_in)); weights stored (out, in) like torch."""
    dims = [(obs_dim, 64), (64, 16), (16, 16), (16, n_actions)]
    params = []
    for fan_in, fan_out in dims:
        key, kw, kb = jax.random.split(key, 3)
        bound = 1.0 / float(fan_in) ** 0.5
        w = jax.random.uniform(kw, (fan_out, fan_in), jnp.float32, -bound, bound)
        b = jax.random.uniform(kb, (fan_out,), jnp.float32, -bound, bound)
        params.append((w, b))
    return params


def prepare_h_params(layer_params):
    """Pad torch-layout (out, in) weights/biases for the kernel."""
    (w1, b1), (w2, b2), (w3, b3), (w4, b4) = layer_params
    obs_dim = int(w1.shape[1])
    n_actions = int(w4.shape[0])
    # Loud shape checks instead of silent clipping.
    assert w1.shape[0] == 64, w1.shape
    assert w2.shape == (16, 64), w2.shape
    assert w3.shape == (16, 16), w3.shape
    assert w4.shape[1] == 16, w4.shape
    assert b1.shape == (64,) and b2.shape == (16,) and b3.shape == (16,)
    assert b4.shape == (n_actions,)

    obs_pad = _round_up(obs_dim, 8)
    n_act_pad = _round_up(n_actions, 8)

    w1p = jnp.zeros((64, obs_pad), jnp.float32).at[:, :obs_dim].set(w1)
    w4p = jnp.zeros((n_act_pad, 16), jnp.float32).at[:n_actions, :].set(w4)
    b4p = jnp.zeros((n_act_pad, 1), jnp.float32).at[:n_actions, :].set(
        b4.reshape(-1, 1))

    prepared = dict(
        w1=w1p, b1=b1.reshape(-1, 1).astype(jnp.float32),
        w2=w2.astype(jnp.float32), b2=b2.reshape(-1, 1).astype(jnp.float32),
        w3=w3.astype(jnp.float32), b3=b3.reshape(-1, 1).astype(jnp.float32),
        w4=w4p, b4=b4p,
        obs_dim=obs_dim, obs_pad=obs_pad,
        n_actions=n_actions, n_act_pad=n_act_pad,
    )
    return prepared


def _pick_batch_tile(batch, block_batch):
    """Batch tile (lanes) and padded batch.  block_batch is sweepable
    (raise on v5e/v6e for very large batches to amortize per-step overhead)."""
    block_batch = max(LANE, _round_up(block_batch, LANE))
    b_min = _round_up(batch, LANE)
    tb = min(block_batch, b_min)
    # v7x: if the padded batch fits in <=2 max-size tiles, halve the tile so the
    # "parallel" grid axis has >=2 steps and both TensorCores get work.
    if b_min > LANE:
        half = _round_up((b_min + 1) // 2, LANE)
        tb = min(tb, max(LANE, half))
    b_pad = _round_up(batch, tb)
    return tb, b_pad


def h_forward(s, prepared, *, block_batch=1024):
    """Pallas-fused forward pass. s: (batch, obs_dim) -> (batch, n_actions)."""
    obs_dim = prepared["obs_dim"]
    obs_pad = prepared["obs_pad"]
    n_actions = prepared["n_actions"]
    n_act_pad = prepared["n_act_pad"]

    s = jnp.asarray(s, jnp.float32)            # torch.FloatTensor(s)
    batch = s.shape[0]
    assert s.shape[1] == obs_dim, (s.shape, obs_dim)

    tb, b_pad = _pick_batch_tile(batch, block_batch)

    # Batch-on-lanes layout: (obs_pad, b_pad), zero-padded rows/lanes.
    s_t = jnp.zeros((obs_pad, b_pad), jnp.float32).at[:obs_dim, :batch].set(s.T)

    const = lambda i: (0, 0)                   # grid-invariant (DMA'd once)
    out = pl.pallas_call(
        _h_mlp_kernel,
        out_shape=jax.ShapeDtypeStruct((n_act_pad, b_pad), jnp.float32),
        grid=(b_pad // tb,),
        in_specs=[
            pl.BlockSpec((obs_pad, tb), lambda i: (0, i)),          # s tile
            pl.BlockSpec(prepared["w1"].shape, const),
            pl.BlockSpec(prepared["b1"].shape, const),
            pl.BlockSpec(prepared["w2"].shape, const),
            pl.BlockSpec(prepared["b2"].shape, const),
            pl.BlockSpec(prepared["w3"].shape, const),
            pl.BlockSpec(prepared["b3"].shape, const),
            pl.BlockSpec(prepared["w4"].shape, const),
            pl.BlockSpec(prepared["b4"].shape, const),
        ],
        out_specs=pl.BlockSpec((n_act_pad, tb), lambda i: (0, i)),
        compiler_params=pltpu.CompilerParams(
            dimension_semantics=("parallel",)),   # shard batch tiles across TCs
    )(s_t,
      prepared["w1"], prepared["b1"],
      prepared["w2"], prepared["b2"],
      prepared["w3"], prepared["b3"],
      prepared["w4"], prepared["b4"])

    return out[:n_actions, :batch].T


def h_forward_ref(s, layer_params):
    """Pure-JAX f32 reference (true ELU) for correctness checking."""
    x = jnp.asarray(s, jnp.float32)
    for i, (w, b) in enumerate(layer_params):
        x = x @ w.T + b
        if i < len(layer_params) - 1:
            x = jnp.where(x > 0, x, jnp.expm1(x))
    return x


if __name__ == "__main__":
    key = jax.random.PRNGKey(0)

    # Small, CartPole-like env: obs_dim=4, n_actions=2.
    obs_dim, n_actions = 4, 2
    key, k_params = jax.random.split(key)
    params = init_h_params(k_params, obs_dim, n_actions)
    prepared = prepare_h_params(params)

    # Case 1: tiny batch (single grid step).
    key, k_s = jax.random.split(key)
    s_small = jax.random.normal(k_s, (8, obs_dim), jnp.float32)
    out_small = jax.block_until_ready(h_forward(s_small, prepared))
    ref_small = h_forward_ref(s_small, params)
    assert out_small.shape == (8, n_actions)
    assert jnp.allclose(out_small, ref_small, atol=1e-4, rtol=1e-4), \
        "Pallas output mismatch vs reference (small batch)"

    # Case 2: multi-tile batch (exercises padding + >=2 parallel grid steps).
    key, k_s2 = jax.random.split(key)
    s_big = jax.random.normal(k_s2, (384, obs_dim), jnp.float32)
    out_big = jax.block_until_ready(h_forward(s_big, prepared))
    ref_big = h_forward_ref(s_big, params)
    assert out_big.shape == (384, n_actions)
    assert jnp.allclose(out_big, ref_big, atol=1e-4, rtol=1e-4), \
        "Pallas output mismatch vs reference (multi-tile batch)"

    print("KERNEL_OK")
</pallas_src>

<mosaic_0001>
module attributes {stable_mosaic.version = 11 : i64} {
  func.func @_h_mlp_kernel(%arg0: i32, %arg1: memref<8x128xf32, #tpu.memory_space<vmem>>, %arg2: memref<64x8xf32, #tpu.memory_space<vmem>>, %arg3: memref<64x1xf32, #tpu.memory_space<vmem>>, %arg4: memref<16x64xf32, #tpu.memory_space<vmem>>, %arg5: memref<16x1xf32, #tpu.memory_space<vmem>>, %arg6: memref<16x16xf32, #tpu.memory_space<vmem>>, %arg7: memref<16x1xf32, #tpu.memory_space<vmem>>, %arg8: memref<8x16xf32, #tpu.memory_space<vmem>>, %arg9: memref<8x1xf32, #tpu.memory_space<vmem>>, %arg10: memref<8x128xf32, #tpu.memory_space<vmem>>) attributes {dimension_semantics = [#tpu.dimension_semantics<parallel>], iteration_bounds = array<i64: 1>, scalar_prefetch = 0 : i64, scratch_operands = 0 : i64, tpu.core_type = #tpu.core_type<tc>, window_params = [{transform_indices = @transform_0, window_bounds = array<i64: 8, 128>}, {pipeline_mode = #tpu.pipeline_mode<synchronous>, transform_indices = @transform_1, window_bounds = array<i64: 64, 8>}, {pipeline_mode = #tpu.pipeline_mode<synchronous>, transform_indices = @transform_2, window_bounds = array<i64: 64, 1>}, {pipeline_mode = #tpu.pipeline_mode<synchronous>, transform_indices = @transform_3, window_bounds = array<i64: 16, 64>}, {pipeline_mode = #tpu.pipeline_mode<synchronous>, transform_indices = @transform_4, window_bounds = array<i64: 16, 1>}, {pipeline_mode = #tpu.pipeline_mode<synchronous>, transform_indices = @transform_5, window_bounds = array<i64: 16, 16>}, {pipeline_mode = #tpu.pipeline_mode<synchronous>, transform_indices = @transform_6, window_bounds = array<i64: 16, 1>}, {pipeline_mode = #tpu.pipeline_mode<synchronous>, transform_indices = @transform_7, window_bounds = array<i64: 8, 16>}, {pipeline_mode = #tpu.pipeline_mode<synchronous>, transform_indices = @transform_8, window_bounds = array<i64: 8, 1>}, {transform_indices = @transform_9, window_bounds = array<i64: 8, 128>}]} {
    %c0 = arith.constant 0 : index
    %c0_0 = arith.constant 0 : index
    %0 = vector.load %arg1[%c0, %c0_0] : memref<8x128xf32, #tpu.memory_space<vmem>>, vector<8x128xf32>
    %c0_1 = arith.constant 0 : index
    %c0_2 = arith.constant 0 : index
    %1 = vector.load %arg2[%c0_1, %c0_2] : memref<64x8xf32, #tpu.memory_space<vmem>>, vector<64x8xf32>
    %cst = arith.constant dense<0.000000e+00> : vector<64x128xf32>
    %2 = tpu.matmul %1, %0, %cst {dimension_numbers = #tpu.dot_dimension_numbers<[1], [0], [0], [1], [0, 0, 1, 1], [], []>} : vector<64x8xf32>, vector<8x128xf32>, vector<64x128xf32> -> vector<64x128xf32>
    %c0_3 = arith.constant 0 : index
    %c0_4 = arith.constant 0 : index
    %3 = vector.load %arg3[%c0_3, %c0_4] : memref<64x1xf32, #tpu.memory_space<vmem>>, vector<64x1xf32>
    %4 = vector.broadcast %3 : vector<64x1xf32> to vector<64x128xf32>
    %5 = arith.addf %2, %4 : vector<64x128xf32>
    %cst_5 = arith.constant 0.000000e+00 : f32
    %6 = vector.broadcast %cst_5 : f32 to vector<64x128xf32>
    %7 = arith.cmpf ogt, %5, %6 : vector<64x128xf32>
    %cst_6 = arith.constant 0.000000e+00 : f32
    %8 = vector.broadcast %cst_6 : f32 to vector<64x128xf32>
    %9 = arith.minimumf %5, %8 : vector<64x128xf32>
    %10 = math.exp %9 : vector<64x128xf32>
    %cst_7 = arith.constant 1.000000e+00 : f32
    %11 = vector.broadcast %cst_7 : f32 to vector<64x128xf32>
    %12 = arith.subf %10, %11 : vector<64x128xf32>
    %13 = arith.select %7, %5, %12 : vector<64x128xi1>, vector<64x128xf32>
    %c0_8 = arith.constant 0 : index
    %c0_9 = arith.constant 0 : index
    %14 = vector.load %arg4[%c0_8, %c0_9] : memref<16x64xf32, #tpu.memory_space<vmem>>, vector<16x64xf32>
    %cst_10 = arith.constant dense<0.000000e+00> : vector<16x128xf32>
    %15 = tpu.matmul %14, %13, %cst_10 {dimension_numbers = #tpu.dot_dimension_numbers<[1], [0], [0], [1], [0, 0, 1, 1], [], []>} : vector<16x64xf32>, vector<64x128xf32>, vector<16x128xf32> -> vector<16x128xf32>
    %c0_11 = arith.constant 0 : index
    %c0_12 = arith.constant 0 : index
    %16 = vector.load %arg5[%c0_11, %c0_12] : memref<16x1xf32, #tpu.memory_space<vmem>>, vector<16x1xf32>
    %17 = vector.broadcast %16 : vector<16x1xf32> to vector<16x128xf32>
    %18 = arith.addf %15, %17 : vector<16x128xf32>
    %cst_13 = arith.constant 0.000000e+00 : f32
    %19 = vector.broadcast %cst_13 : f32 to vector<16x128xf32>
    %20 = arith.cmpf ogt, %18, %19 : vector<16x128xf32>
    %cst_14 = arith.constant 0.000000e+00 : f32
    %21 = vector.broadcast %cst_14 : f32 to vector<16x128xf32>
    %22 = arith.minimumf %18, %21 : vector<16x128xf32>
    %23 = math.exp %22 : vector<16x128xf32>
    %cst_15 = arith.constant 1.000000e+00 : f32
    %24 = vector.broadcast %cst_15 : f32 to vector<16x128xf32>
    %25 = arith.subf %23, %24 : vector<16x128xf32>
    %26 = arith.select %20, %18, %25 : vector<16x128xi1>, vector<16x128xf32>
    %c0_16 = arith.constant 0 : index
    %c0_17 = arith.constant 0 : index
    %27 = vector.load %arg6[%c0_16, %c0_17] : memref<16x16xf32, #tpu.memory_space<vmem>>, vector<16x16xf32>
    %cst_18 = arith.constant dense<0.000000e+00> : vector<16x128xf32>
    %28 = tpu.matmul %27, %26, %cst_18 {dimension_numbers = #tpu.dot_dimension_numbers<[1], [0], [0], [1], [0, 0, 1, 1], [], []>} : vector<16x16xf32>, vector<16x128xf32>, vector<16x128xf32> -> vector<16x128xf32>
    %c0_19 = arith.constant 0 : index
    %c0_20 = arith.constant 0 : index
    %29 = vector.load %arg7[%c0_19, %c0_20] : memref<16x1xf32, #tpu.memory_space<vmem>>, vector<16x1xf32>
    %30 = vector.broadcast %29 : vector<16x1xf32> to vector<16x128xf32>
    %31 = arith.addf %28, %30 : vector<16x128xf32>
    %cst_21 = arith.constant 0.000000e+00 : f32
    %32 = vector.broadcast %cst_21 : f32 to vector<16x128xf32>
    %33 = arith.cmpf ogt, %31, %32 : vector<16x128xf32>
    %cst_22 = arith.constant 0.000000e+00 : f32
    %34 = vector.broadcast %cst_22 : f32 to vector<16x128xf32>
    %35 = arith.minimumf %31, %34 : vector<16x128xf32>
    %36 = math.exp %35 : vector<16x128xf32>
    %cst_23 = arith.constant 1.000000e+00 : f32
    %37 = vector.broadcast %cst_23 : f32 to vector<16x128xf32>
    %38 = arith.subf %36, %37 : vector<16x128xf32>
    %39 = arith.select %33, %31, %38 : vector<16x128xi1>, vector<16x128xf32>
    %c0_24 = arith.constant 0 : index
    %c0_25 = arith.constant 0 : index
    %40 = vector.load %arg8[%c0_24, %c0_25] : memref<8x16xf32, #tpu.memory_space<vmem>>, vector<8x16xf32>
    %cst_26 = arith.constant dense<0.000000e+00> : vector<8x128xf32>
    %41 = tpu.matmul %40, %39, %cst_26 {dimension_numbers = #tpu.dot_dimension_numbers<[1], [0], [0], [1], [0, 0, 1, 1], [], []>} : vector<8x16xf32>, vector<16x128xf32>, vector<8x128xf32> -> vector<8x128xf32>
    %c0_27 = arith.constant 0 : index
    %c0_28 = arith.constant 0 : index
    %42 = vector.load %arg9[%c0_27, %c0_28] : memref<8x1xf32, #tpu.memory_space<vmem>>, vector<8x1xf32>
    %43 = vector.broadcast %42 : vector<8x1xf32> to vector<8x128xf32>
    %44 = arith.addf %41, %43 : vector<8x128xf32>
    %c0_29 = arith.constant 0 : index
    %c0_30 = arith.constant 0 : index
    %45 = vector.load %arg10[%c0_29, %c0_30] : memref<8x128xf32, #tpu.memory_space<vmem>>, vector<8x128xf32>
    tpu.vector_store %arg10[%c0_29, %c0_30], %44 {strides = array<i32>} : memref<8x128xf32, #tpu.memory_space<vmem>>, vector<8x128xf32>,
    return
  }
  func.func @transform_0(%arg0: i32) -> (i32, i32) {
    %c0_i32 = arith.constant 0 : i32
    %c0_i32_0 = arith.constant 0 : i32
    return %c0_i32, %arg0 : i32, i32
  }
  func.func @transform_1(%arg0: i32) -> (i32, i32) {
    %c0_i32 = arith.constant 0 : i32
    %c0_i32_0 = arith.constant 0 : i32
    %c0_i32_1 = arith.constant 0 : i32
    return %c0_i32, %c0_i32_0 : i32, i32
  }
  func.func @transform_2(%arg0: i32) -> (i32, i32) {
    %c0_i32 = arith.constant 0 : i32
    %c0_i32_0 = arith.constant 0 : i32
    %c0_i32_1 = arith.constant 0 : i32
    return %c0_i32, %c0_i32_0 : i32, i32
  }
  func.func @transform_3(%arg0: i32) -> (i32, i32) {
    %c0_i32 = arith.constant 0 : i32
    %c0_i32_0 = arith.constant 0 : i32
    %c0_i32_1 = arith.constant 0 : i32
    return %c0_i32, %c0_i32_0 : i32, i32
  }
  func.func @transform_4(%arg0: i32) -> (i32, i32) {
    %c0_i32 = arith.constant 0 : i32
    %c0_i32_0 = arith.constant 0 : i32
    %c0_i32_1 = arith.constant 0 : i32
    return %c0_i32, %c0_i32_0 : i32, i32
  }
  func.func @transform_5(%arg0: i32) -> (i32, i32) {
    %c0_i32 = arith.constant 0 : i32
    %c0_i32_0 = arith.constant 0 : i32
    %c0_i32_1 = arith.constant 0 : i32
    return %c0_i32, %c0_i32_0 : i32, i32
  }
  func.func @transform_6(%arg0: i32) -> (i32, i32) {
    %c0_i32 = arith.constant 0 : i32
    %c0_i32_0 = arith.constant 0 : i32
    %c0_i32_1 = arith.constant 0 : i32
    return %c0_i32, %c0_i32_0 : i32, i32
  }
  func.func @transform_7(%arg0: i32) -> (i32, i32) {
    %c0_i32 = arith.constant 0 : i32
    %c0_i32_0 = arith.constant 0 : i32
    %c0_i32_1 = arith.constant 0 : i32
    return %c0_i32, %c0_i32_0 : i32, i32
  }
  func.func @transform_8(%arg0: i32) -> (i32, i32) {
    %c0_i32 = arith.constant 0 : i32
    %c0_i32_0 = arith.constant 0 : i32
    %c0_i32_1 = arith.constant 0 : i32
    return %c0_i32, %c0_i32_0 : i32, i32
  }
  func.func @transform_9(%arg0: i32) -> (i32, i32) {
    %c0_i32 = arith.constant 0 : i32
    %c0_i32_0 = arith.constant 0 : i32
    return %c0_i32, %arg0 : i32, i32
  }
}

</mosaic_0001>

<bundles_post_ra>
// kernel: tpu_custom_call.1
= control target key start
LH: loop header
LB: loop body
LE: loop exit
PB: predicated region body
PF: predicated region fallthrough
CT: control target
= control target key end

     0   :  { %v445_v3 = vmov 0   ;;  %vm90_vm0 = vcmask 64512   ;;  %s592_s0 = inlined_call_operand.vmem [shape: f32[8,128], index: 0, kind: input, shape index: {}]   ;;  %s593_s1 = inlined_call_operand.vmem [shape: f32[64,8], index: 1, kind: input, shape index: {}]   ;;  %s594_s2 = inlined_call_operand.vmem [shape: f32[64,1], index: 2, kind: input, shape index: {}]   ;;  %s595_s3 = inlined_call_operand.vmem [shape: f32[16,64], index: 3, kind: input, shape index: {}]   ;;  %s596_s4 = inlined_call_operand.vmem [shape: f32[16,1], index: 4, kind: input, shape index: {}]   ;;  %s597_s5 = inlined_call_operand.vmem [shape: f32[16,16], index: 5, kind: input, shape index: {}]   ;;  %s598_s6 = inlined_call_operand.vmem [shape: f32[16,1], index: 6, kind: input, shape index: {}]   ;;  %s599_s7 = inlined_call_operand.vmem [shape: f32[8,16], index: 7, kind: input, shape index: {}]   ;;  %s600_s8 = inlined_call_operand.vmem [shape: f32[8,1], index: 8, kind: input, shape index: {}]   ;;  %s601_s9 = inlined_call_operand.hbm [shape: f32[8,128], index: 9, kind: output, shape index: {}]  }
   0x1   :  { %v33_v0 = vld [vmem:[%s592_s0] sm:$0xff]  ;;  %v49_v1 = vld [vmem:[%s594_s2 + $0x38] sm:$0xff]  ;;  %v47_v2 = vld [vmem:[%s594_s2 + $0x28] sm:$0xff]  ;;  %393 = vset.pattern.permute.xlu1 %v445_v3  ;;  %392 = vset.pattern.permute.xlu0 %v445_v3 }
   0x2   :  { %v34_v4 = vld [vmem:[%s593_s1] sm:$0xff]  ;;  %130 = vmatpush.msra.mxu0 %v33_v0  ;;  %389 = vmatpush.msra.mxu3 %v33_v0  ;;  %v39_v5 = vld [vmem:[%s593_s1 + $0x28] sm:$0xff]  ;;  %v45_v7 = vld [vmem:[%s594_s2 + $0x18] sm:$0xff] }
   0x3   :  { %v38_v6 = vld [vmem:[%s593_s1 + $0x20] sm:$0xff]  ;;  %87 = vperm.xlu0 %392, %v49_v1   ;;  %77 = vperm.xlu1 %393, %v47_v2  }
   0x4   :  { %388 = vmatpush.msra.mxu2 %v33_v0  ;;  %363 = vmatmul.msk.f32.vlgmr.msra.gmra.mxu0 %vm90_vm0, %v34_v4 }
   0x5   :  { %368 = vmatmul.msk.f32.vlgmr.msra.gmra.mxu3 %vm90_vm0, %v39_v5  ;;  %367 = vmatmul.msk.f32.vlgmr.msra.gmra.mxu2 %vm90_vm0, %v38_v6 }
   0x6   :  { %394 = vset.pattern.permute.xlu2 %v445_v3 }
   0x7   :  { %67 = vperm.xlu2 %394, %v45_v7  }
   0x8   :  { %14 = vsyncpa [#allocation3], 0  ;;  %v48_v8 = vld [vmem:[%s594_s2 + $0x30] sm:$0xff]  ;;  %v46_v9 = vld [vmem:[%s594_s2 + $0x20] sm:$0xff]  ;;  %vm218_vm9 = vcmask 523264   ;;  %vm274_vm12 = vcmask 130048  }
   0x9   :  { %v35_v10 = vld [vmem:[%s593_s1 + $0x8] sm:$0xff]  ;;  %v40_v11 = vld [vmem:[%s593_s1 + $0x30] sm:$0xff]  ;;  %v42_v14 = vld [vmem:[%s594_s2] sm:$0xff]  ;;  %s446_s12 = smov [#allocation2]   ;;  %s354_s16 = sshll.u32 %s601_s9, 4  ;;  %s355_s16 = int_to_ptr.hbm [resolvable:$true] %s354_s16 }
   0xa   :  { %v44_v12 = vld [vmem:[%s594_s2 + $0x10] sm:$0xff]  ;;  %v43_v13 = vld [vmem:[%s594_s2 + $0x8] sm:$0xff]  ;;  %v41_v16 = vld [vmem:[%s593_s1 + $0x38] sm:$0xff]  ;;  %s352_s13 = sshll.u32 %s446_s12, 4  ;;  %s353_s13 = int_to_ptr.vmem [resolvable:$true] %s352_s13 }
   0xb   :  { %82 = vperm.xlu0 %392, %v48_v8   ;;  %72 = vperm.xlu1 %393, %v46_v9   ;;  %v36_v15 = vld [vmem:[%s593_s1 + $0x10] sm:$0xff]  ;;  %v207_v17 = vld [vmem:[%s596_s4 + $0x8] sm:$0xff]  ;;  %v206_v18 = vld [vmem:[%s596_s4] sm:$0xff] }
   0xc   :  { %364 = vmatmul.msk.f32.gmra.mxu0 %vm90_vm0, %v35_v10  ;;  %v263_v19 = vld [vmem:[%s598_s6 + $0x8] sm:$0xff]  ;;  %v37_v20 = vld [vmem:[%s593_s1 + $0x18] sm:$0xff]  ;;  %v262_v21 = vld [vmem:[%s598_s6] sm:$0xff] }
   0xd   :  { %369 = vmatmul.msk.f32.gmra.mxu3 %vm90_vm0, %v40_v11  ;;  %v317_v22 = vld [vmem:[%s600_s8] sm:$0xff] }
   0xf   :  { %62 = vperm.xlu2 %394, %v44_v12  }
  0x13   :  { %57 = vperm.xlu0 %392, %v43_v13   ;;  %52 = vperm.xlu1 %393, %v42_v14  }
  0x14   :  { %365 = vmatmul.msk.f32.gmra.mxu0 %vm90_vm0, %v36_v15 }
  0x15   :  { %370 = vmatmul.msk.f32.gmra.mxu3 %vm90_vm0, %v41_v16 }
  0x17   :  { %215 = vperm.xlu2 %394, %v207_v17  }
  0x1b   :  { %210 = vperm.xlu0 %392, %v206_v18   ;;  %271 = vperm.xlu1 %393, %v263_v19  }
  0x1c   :  { %366 = vmatmul.msk.f32.gmra.mxu0 %vm90_vm0, %v37_v20 }
  0x1f   :  { %266 = vperm.xlu2 %394, %v262_v21  }
  0x23   :  { %320 = vperm.xlu0 %392, %v317_v22   ;;  %v204_v22 = vld [vmem:[%s595_s3] sm:$0xff] }
  0x61   :  { %v68_v28 = vpop.permute.xlu2 %67 }
  0x69   :  { %v63_v39 = vpop.permute.xlu2 %62 }
  0x75   :  { %v78_v24 = vpop.permute.xlu1 %77  ;;  %v88_v25 = vpop.permute.xlu0 %87 }
  0x7d   :  { %v73_v29 = vpop.permute.xlu1 %72  ;;  %v83_v30 = vpop.permute.xlu0 %82 }
  0x81   :  { %v132_v23 = vpop.f32.mrf.mxu0 }
  0x85   :  { %v53_v41 = vpop.permute.xlu1 %52  ;;  %v58_v47 = vpop.permute.xlu0 %57 }
  0x86   :  { %v133_v52 = vadd.f32 %v132_v23, %v53_v41 }
  0x88   :  { %v147_v26 = vpop.f32.mrf.mxu3  ;;  %v144_v35 = vpop.f32.mrf.mxu2  ;;  %v164_v59 = vmin.f32 %v133_v52, 0.0  ;;  %vm156_vm8 = vcmp.gt.f32.partialorder %v133_v52, 0.0 }
  0x89   :  { %v135_v27 = vpop.f32.mrf.mxu0  ;;  %v148_v34 = vadd.f32 %v147_v26, %v78_v24  ;;  %v145_v36 = vadd.f32 %v144_v35, %v73_v29  ;;  %v205_v24 = vld [vmem:[%s595_s3 + $0x8] sm:$0xff]  ;;  %v216_v29 = vpop.permute.xlu2 %215 }
  0x8a   :  { %v136_v50 = vadd.f32 %v135_v27, %v58_v47  ;;  %v172_v1 = vmul.f32 1.442695, %v164_v59 }
  0x8b   :  { %v169_v38 = vmin.f32 %v148_v34, 0.0  ;;  %v168_v42 = vmin.f32 %v145_v36, 0.0  ;;  %vm161_vm3 = vcmp.gt.f32.partialorder %v148_v34, 0.0  ;;  %vm160_vm4 = vcmp.gt.f32.partialorder %v145_v36, 0.0 }
  0x8c   :  { %v165_v57 = vmin.f32 %v136_v50, 0.0  ;;  %vm157_vm7 = vcmp.gt.f32.partialorder %v136_v50, 0.0 }
  0x8d   :  { %v182_v48 = vmul.f32 1.442695, %v169_v38  ;;  %v180_v54 = vmul.f32 1.442695, %v168_v42  ;;  %v261_v42 = vld [vmem:[%s597_s5 + $0x8] sm:$0xff]  ;;  %v272_v47 = vpop.permute.xlu1 %271 }
  0x8e   :  { %v174_v62 = vmul.f32 1.442695, %v165_v57 }
  0x90   :  { %v150_v31 = vpop.f32.mrf.mxu3 }
  0x91   :  { %v151_v32 = vadd.f32 %v150_v31, %v83_v30  ;;  %v138_v33 = vpop.f32.mrf.mxu0 }
  0x92   :  { %v139_v44 = vadd.f32 %v138_v33, %v63_v39 }
  0x93   :  { %v170_v37 = vmin.f32 %v151_v32, 0.0  ;;  %vm162_vm2 = vcmp.gt.f32.partialorder %v151_v32, 0.0 }
  0x94   :  { %v166_v55 = vmin.f32 %v139_v44, 0.0  ;;  %vm158_vm6 = vcmp.gt.f32.partialorder %v139_v44, 0.0 }
  0x95   :  { %v184_v43 = vmul.f32 1.442695, %v170_v37 }
  0x96   :  { %v176_v60 = vmul.f32 1.442695, %v166_v55 }
  0x97   :  { %395 = vpow2.f32 %v184_v43  ;;  %v267_v43 = vpop.permute.xlu2 %266 }
  0x98   :  { %v153_v40 = vpop.f32.mrf.mxu3  ;;  %397 = vpow2.f32 %v182_v48 }
  0x99   :  { %v154_v45 = vadd.f32 %v153_v40, %v88_v25  ;;  %v141_v46 = vpop.f32.mrf.mxu0  ;;  %v211_v25 = vpop.permute.xlu0 %210  ;;  %v260_v40 = vld [vmem:[%s597_s5] sm:$0xff] }
  0x9a   :  { %v142_v49 = vadd.f32 %v141_v46, %v68_v28 }
  0x9b   :  { %v171_v51 = vmin.f32 %v154_v45, 0.0  ;;  %vm163_vm1 = vcmp.gt.f32.partialorder %v154_v45, 0.0 }
  0x9c   :  { %v167_v53 = vmin.f32 %v142_v49, 0.0  ;;  %vm159_vm5 = vcmp.gt.f32.partialorder %v142_v49, 0.0 }
  0x9d   :  { %v186_v56 = vmul.f32 1.442695, %v171_v51  ;;  %v396_v61 = vpop.eup %395 }
  0x9e   :  { %v178_v58 = vmul.f32 1.442695, %v167_v53  ;;  %v398_v63 = vpop.eup %397  ;;  %v377_v3 = vadd.f32 -1.0, %v396_v61 }
  0x9f   :  { %399 = vpow2.f32 %v186_v56  ;;  %v376_v6 = vadd.f32 -1.0, %v398_v63 }
  0xa0   :  { %401 = vpow2.f32 %v180_v54  ;;  %v202_v8 = vsel %vm162_vm2, %v151_v32, %v377_v3 }
  0xa1   :  { %403 = vpow2.f32 %v178_v58  ;;  %v201_v11 = vsel %vm161_vm3, %v148_v34, %v376_v6  ;;  %v316_v58 = vld [vmem:[%s599_s7] sm:$0xff] }
  0xa2   :  { %405 = vpow2.f32 %v176_v60  ;;  %v321_v60 = vpop.permute.xlu0 %320 }
  0xa3   :  { %407 = vpow2.f32 %v174_v62 }
  0xa4   :  { %409 = vpow2.f32 %v172_v1 }
  0xa5   :  { %v400_v0 = vpop.eup %399 }
  0xa6   :  { %v378_v2 = vadd.f32 -1.0, %v400_v0  ;;  %v402_v4 = vpop.eup %401 }
  0xa7   :  { %v404_v7 = vpop.eup %403  ;;  %v375_v9 = vadd.f32 -1.0, %v402_v4 }
  0xa8   :  { %v203_v5 = vsel %vm163_vm1, %v154_v45, %v378_v2  ;;  %v406_v10 = vpop.eup %405  ;;  %v374_v12 = vadd.f32 -1.0, %v404_v7 }
  0xa9   :  { %233 = vmatpush.msra.mxu1 %v203_v5  ;;  %v408_v13 = vpop.eup %407  ;;  %v200_v14 = vsel %vm160_vm4, %v145_v36, %v375_v9  ;;  %v373_v15 = vadd.f32 -1.0, %v406_v10 }
  0xaa   :  { %v410_v16 = vpop.eup %409  ;;  %v199_v17 = vsel %vm159_vm5, %v142_v49, %v374_v12  ;;  %v372_v18 = vadd.f32 -1.0, %v408_v13 }
  0xab   :  { %234 = vmatpush.msra.mxu1 %v202_v8  ;;  %v198_v19 = vsel %vm158_vm6, %v139_v44, %v373_v15  ;;  %v371_v20 = vadd.f32 -1.0, %v410_v16 }
  0xac   :  { %v197_v21 = vsel %vm157_vm7, %v136_v50, %v372_v18 }
  0xad   :  { %235 = vmatpush.msra.mxu1 %v201_v11  ;;  %v196_v23 = vsel %vm156_vm8, %v133_v52, %v371_v20 }
  0xaf   :  { %236 = vmatpush.msra.mxu1 %v200_v14 }
  0xb1   :  { %237 = vmatpush.msra.mxu1 %v199_v17 }
  0xb3   :  { %238 = vmatpush.msra.mxu1 %v198_v19 }
  0xb5   :  { %239 = vmatpush.msra.mxu1 %v197_v21 }
  0xb7   :  { %240 = vmatpush.msra.mxu1 %v196_v23 }
  0xb8   :  { %379 = vmatmul.msk.f32.vlgmr.msra.gmra.mxu1 %vm218_vm9, %v204_v22 }
  0xc0   :  { %380 = vmatmul.msk.f32.gmra.mxu1 %vm218_vm9, %v205_v24 }
 0x135   :  { %v242_v26 = vpop.f32.mrf.mxu1 }
 0x136   :  { %v243_v27 = vadd.f32 %v242_v26, %v211_v25 }
 0x138   :  { %v250_v28 = vmin.f32 %v243_v27, 0.0  ;;  %vm248_vm11 = vcmp.gt.f32.partialorder %v243_v27, 0.0 }
 0x13a   :  { %v252_v31 = vmul.f32 1.442695, %v250_v28 }
 0x13c   :  { %411 = vpow2.f32 %v252_v31 }
 0x13d   :  { %v245_v30 = vpop.f32.mrf.mxu1 }
 0x13e   :  { %v246_v32 = vadd.f32 %v245_v30, %v216_v29 }
 0x140   :  { %v251_v33 = vmin.f32 %v246_v32, 0.0  ;;  %vm249_vm10 = vcmp.gt.f32.partialorder %v246_v32, 0.0 }
 0x142   :  { %v254_v34 = vmul.f32 1.442695, %v251_v33  ;;  %v412_v35 = vpop.eup %411 }
 0x143   :  { %v381_v38 = vadd.f32 -1.0, %v412_v35 }
 0x144   :  { %413 = vpow2.f32 %v254_v34 }
 0x145   :  { %v258_v41 = vsel %vm248_vm11, %v243_v27, %v381_v38 }
 0x14a   :  { %v414_v36 = vpop.eup %413 }
 0x14b   :  { %v382_v37 = vadd.f32 -1.0, %v414_v36 }
 0x14d   :  { %v259_v39 = vsel %vm249_vm10, %v246_v32, %v382_v37 }
 0x14e   :  { %295 = vmatpush.msrb.mxu2 %v259_v39 }
 0x150   :  { %296 = vmatpush.msrb.mxu2 %v258_v41 }
 0x151   :  { %383 = vmatmul.msk.f32.vlgmr.msrb.gmra.mxu2 %vm274_vm12, %v260_v40 }
 0x159   :  { %384 = vmatmul.msk.f32.gmra.mxu2 %vm274_vm12, %v261_v42 }
 0x1d4   :  { %v298_v44 = vpop.f32.mrf.mxu2 }
 0x1d5   :  { %v299_v45 = vadd.f32 %v298_v44, %v267_v43 }
 0x1d7   :  { %v306_v46 = vmin.f32 %v299_v45, 0.0  ;;  %vm304_vm14 = vcmp.gt.f32.partialorder %v299_v45, 0.0 }
 0x1d9   :  { %v308_v49 = vmul.f32 1.442695, %v306_v46 }
 0x1db   :  { %415 = vpow2.f32 %v308_v49 }
 0x1dc   :  { %v301_v48 = vpop.f32.mrf.mxu2 }
 0x1dd   :  { %v302_v50 = vadd.f32 %v301_v48, %v272_v47 }
 0x1df   :  { %v307_v51 = vmin.f32 %v302_v50, 0.0  ;;  %vm305_vm13 = vcmp.gt.f32.partialorder %v302_v50, 0.0 }
 0x1e1   :  { %v310_v52 = vmul.f32 1.442695, %v307_v51  ;;  %v416_v53 = vpop.eup %415 }
 0x1e2   :  { %v385_v56 = vadd.f32 -1.0, %v416_v53 }
 0x1e3   :  { %417 = vpow2.f32 %v310_v52 }
 0x1e4   :  { %v314_v59 = vsel %vm304_vm14, %v299_v45, %v385_v56 }
 0x1e9   :  { %v418_v54 = vpop.eup %417 }
 0x1ea   :  { %v386_v55 = vadd.f32 -1.0, %v418_v54 }
 0x1ec   :  { %v315_v57 = vsel %vm305_vm13, %v302_v50, %v386_v55 }
 0x1ed   :  { %340 = vmatpush.msrb.mxu3 %v315_v57 }
 0x1ef   :  { %341 = vmatpush.msrb.mxu3 %v314_v59 }
 0x1f0   :  { %387 = vmatmul.msk.f32.vlgmr.msrb.gmra.mxu3 %vm274_vm12, %v316_v58 }
 0x273   :  { %v343_v61 = vpop.f32.mrf.mxu3 }
 0x274   :  { %v344_v62 = vadd.f32 %v343_v61, %v321_v60 }
 0x276   :  { %346 = vst [vmem:[#allocation2] sm:$0xff] %v344_v62 }
 0x277   :  { %357 = dma.vmem_to_hbm [thread:$0]  %s353_s13, 128, %s355_s16, [#allocation3]  }
 0x278   :  { %443 = dma.done.wait [#allocation3], 128  }
 0x279   :  { %444 = vsyncadd [#allocation3], 4294967168 }
 0x27a   :  { %362 = vsyncpa [#allocation3], 1 }

</bundles_post_ra>
